<compile_context>
chip_gen: v6e
topology: v6e:2x2x1
jax: 0.10.0
libtpu: 0.0.40
codegen_flags: <defaults>
</compile_context>

<pallas_src>
import math
import functools

import jax
import jax.numpy as jnp
from jax import lax
from jax.experimental import pallas as pl
from jax.experimental.pallas import tpu as pltpu


# ----------------------------------------------------------------------------
# Pallas kernel: layer-stream-query multi-head attention for `bt` batch items
# ----------------------------------------------------------------------------
def _mha_layer_kernel(ev_ref, ly_ref, bias_ref, wq_ref, wkv_ref, bq_ref, bkv_ref,
                      o_ref, *, n_head, d_k, d_model, L, bt):
    """
    ev_ref   : [bt*L, D]        f32   event-stream half (enc_input)     -> K/V only
    ly_ref   : [bt*L, D]        f32   layer-stream half (layer_ ++ temb) -> Q and K/V
    bias_ref : [bt, L, 2L]      bf16  additive mask bias (0 / -1e9) for layer-query rows
    wq_ref   : [D, d_model]     bf16  Wq * (1/sqrt(d_k))
    wkv_ref  : [D, 2*d_model]   bf16  [Wk | Wv]
    bq_ref   : [1, d_model]     f32   bq * (1/sqrt(d_k))
    bkv_ref  : [1, 2*d_model]   f32   [bk | bv]
    o_ref    : [bt, L, d_model] bf16  attention output for the layer-stream rows
    """
    # ---- QKV projections batched over the full bt*L row tile (fills the MXU
    #      once per weight instead of once per batch item). Q is computed for
    #      the layer rows only; the event-stream queries are never needed.
    ev = ev_ref[...].astype(jnp.bfloat16)                      # [bt*L, D]
    ly = ly_ref[...].astype(jnp.bfloat16)                      # [bt*L, D]
    wq = wq_ref[...]                                           # bf16, scale folded in
    wkv = wkv_ref[...]                                         # bf16
    q_all = jnp.dot(ly, wq, preferred_element_type=jnp.float32) + bq_ref[...]     # [bt*L, dm]
    kv_ly = jnp.dot(ly, wkv, preferred_element_type=jnp.float32) + bkv_ref[...]   # [bt*L, 2dm]
    kv_ev = jnp.dot(ev, wkv, preferred_element_type=jnp.float32) + bkv_ref[...]   # [bt*L, 2dm]

    # ---- per-item attention (bt is capped small; the heavy projection matmul
    #      above is already batched, so this static loop only carries tiny
    #      [L, 2L] score tiles).
    for i in range(bt):
        rows = slice(i * L, (i + 1) * L)                       # f32-sublane aligned (L % 8 == 0)
        q_i = q_all[rows].astype(jnp.bfloat16)                 # [L, dm]  (cast once per item)
        # combined key/value stream for item i: event rows then layer rows
        k_i = jnp.concatenate([kv_ev[rows, :d_model],
                               kv_ly[rows, :d_model]], axis=0).astype(jnp.bfloat16)   # [2L, dm]
        v_i = jnp.concatenate([kv_ev[rows, d_model:],
                               kv_ly[rows, d_model:]], axis=0).astype(jnp.bfloat16)   # [2L, dm]
        bias_i = bias_ref[i].astype(jnp.float32)               # [L, 2L]
        head_outs = []
        for h in range(n_head):                                # static head loop
            hs = slice(h * d_k, (h + 1) * d_k)
            # scores: [L, 2L]   (1/sqrt(d_k) already folded into Wq/bq)
            s = lax.dot_general(q_i[:, hs], k_i[:, hs],
                                (((1,), (1,)), ((), ())),
                                preferred_element_type=jnp.float32) + bias_i
            # softmax over keys, f32 math, approx reciprocal on the EUP slot
            s_max = jnp.max(s, axis=-1, keepdims=True)
            p = jnp.exp(s - s_max)
            p = p * pl.reciprocal(jnp.sum(p, axis=-1, keepdims=True), approx=True)
            head_outs.append(jnp.dot(p.astype(jnp.bfloat16), v_i[:, hs],
                                     preferred_element_type=jnp.float32))
        # assemble all heads, then one lane-dense store per item
        o_ref[i] = jnp.concatenate(head_outs, axis=-1).astype(jnp.bfloat16)
    # TODO(synk): attention dropout is train-only; the eval forward is identity.
    # TODO(synk): for large L a flash-style KV-tiled variant (online softmax,
    # "arbitrary" key-tile grid axis) is needed on v7x (64 MiB VMEM); the
    # head-batched dot_general variant is deferred pending a bundle-dump check
    # that it actually removes the per-head relayouts.


def _vmem_budget_bytes():
    cap = 64 * 1024 * 1024                       # conservative default (v7x per-TC)
    try:
        cap = int(pltpu.get_tpu_info().vmem_capacity_bytes)
    except Exception:
        pass
    return int(min(cap // 2, 64 * 1024 * 1024))  # 32 MiB on v7x, 64 MiB on v5e/v6e


def _pick_batch_tile(B, L, D, d_model, budget):
    """Largest bt that (a) divides B, (b) keeps grid >= 2 so both v7x TCs get
    work, (c) caps the static per-item attention unroll, (d) fits the
    double-buffered blocks + f32 intermediates into the VMEM budget, and
    (e) keeps the 2-D row tiles sublane-aligned (needs L % 8 == 0 for bt>1)."""
    S = 2 * L

    def fits(bt):
        blocks = (2 * bt * L * D * 4            # ev + ly f32 blocks
                  + bt * L * S * 2              # bias bf16
                  + bt * L * d_model * 2)       # out bf16
        weights = D * 3 * d_model * 2 + 3 * d_model * 4
        interm = 2 * bt * L * 5 * d_model * 4   # live q / kv intermediates (rough)
        return 2 * blocks + weights + interm < budget

    best = 1
    for bt in range(1, B + 1):
        if B % bt:
            continue
        if bt > 1 and L % 8 != 0:
            break
        if bt > 4:                               # cap static unroll (vreg pressure)
            break
        if B > 1 and B // bt < 2:                # keep grid >= 2 (v7x megacore)
            break
        if not fits(bt):
            break
        best = bt
    return best


def multi_head_attention_pallas(ev, ly, mask_bias_bf16, wq, wkv, bq, bkv, *, n_head):
    """ev/ly: [B, L, D] f32 stream halves; mask_bias: [B, L, 2L] bf16 additive;
    returns [B, L, d_model] bf16 (layer-stream attention rows, heads concat)."""
    B, L, D = ev.shape
    d_model = wq.shape[1]
    d_k = d_model // n_head
    S = 2 * L
    budget = _vmem_budget_bytes()
    bt = _pick_batch_tile(B, L, D, d_model, budget)

    ev2 = ev.reshape(B * L, D)                   # free bitcast in the wrapper
    ly2 = ly.reshape(B * L, D)

    kernel = functools.partial(_mha_layer_kernel, n_head=n_head, d_k=d_k,
                               d_model=d_model, L=L, bt=bt)
    return pl.pallas_call(
        kernel,
        out_shape=jax.ShapeDtypeStruct((B, L, d_model), jnp.bfloat16),
        grid=(B // bt,),
        in_specs=[
            pl.BlockSpec((bt * L, D), lambda g: (g, 0)),          # event half (f32)
            pl.BlockSpec((bt * L, D), lambda g: (g, 0)),          # layer half (f32)
            pl.BlockSpec((bt, L, S), lambda g: (g, 0, 0)),        # additive mask bias (bf16)
            pl.BlockSpec((D, d_model), lambda g: (0, 0)),         # Wq * scale (bf16)
            pl.BlockSpec((D, 2 * d_model), lambda g: (0, 0)),     # [Wk | Wv]  (bf16)
            pl.BlockSpec((1, d_model), lambda g: (0, 0)),         # bq * scale (f32)
            pl.BlockSpec((1, 2 * d_model), lambda g: (0, 0)),     # [bk | bv]  (f32)
        ],
        out_specs=pl.BlockSpec((bt, L, d_model), lambda g: (g, 0, 0)),
        compiler_params=pltpu.CompilerParams(
            dimension_semantics=("parallel",),
            vmem_limit_bytes=int(budget)),
    )(ev2, ly2, mask_bias_bf16, wq, wkv, bq, bkv)


# ----------------------------------------------------------------------------
# Pure-JAX reference (mirrors the torch module exactly; used only to verify)
# ----------------------------------------------------------------------------
def multi_head_attention_ref(x, mask, wq, bq, wk, bk, wv, bv, *, n_head):
    B, S, _ = x.shape
    d_model = wq.shape[1]
    d_k = d_model // n_head
    q = (x @ wq + bq).reshape(B, S, n_head, d_k).transpose(0, 2, 1, 3)
    k = (x @ wk + bk).reshape(B, S, n_head, d_k).transpose(0, 2, 1, 3)
    v = (x @ wv + bv).reshape(B, S, n_head, d_k).transpose(0, 2, 1, 3)
    s = jnp.einsum("bhqd,bhkd->bhqk", q, k) / math.sqrt(d_k)
    s = jnp.where(mask[:, None] > 0.0, jnp.float32(-1e9), s)
    p = jax.nn.softmax(s, axis=-1)
    o = jnp.einsum("bhqk,bhkd->bhqd", p, v)
    return o.transpose(0, 2, 1, 3).reshape(B, S, d_model)


# ----------------------------------------------------------------------------
# XFMRNHPFast forward (JAX glue + Pallas attention)
# ----------------------------------------------------------------------------
def compute_temporal_embedding(time, div_term, d_time):
    angles = time[..., None] * div_term            # [B, L, d_time//2]
    B, L = time.shape
    pe = jnp.zeros((B, L, d_time), jnp.float32)
    pe = pe.at[..., 0::2].set(jnp.sin(angles))
    pe = pe.at[..., 1::2].set(jnp.cos(angles))
    return pe


def xfmr_nhp_fast_forward(params, event_seqs, time_seqs, batch_non_pad_mask,
                          attention_mask, *, n_head, d_time, use_kernel=True):
    B, L = event_seqs.shape
    npm = batch_non_pad_mask.astype(jnp.float32)

    tem_enc = compute_temporal_embedding(time_seqs, params["div_term"], d_time)
    tem_enc = tem_enc * npm[..., None]
    emb = jnp.tanh(params["emb"][event_seqs])                        # [B, L, d_model]
    d_model = emb.shape[-1]
    d_k = d_model // n_head
    layer_ = jnp.zeros_like(emb)
    tem_enc_layer = tem_enc                                          # extra_times=None

    enc_input = jnp.concatenate([emb, tem_enc], axis=-1)             # [B, L, D] event half

    # layer-stream query rows' mask (the event-stream query rows are fully
    # masked AND discarded by the reference -> dead work, skipped here)
    attn_f = attention_mask.astype(jnp.float32)                      # 1.0 == masked out
    layer_mask = jnp.broadcast_to(
        (jnp.eye(L) < 1.0).astype(jnp.float32)[None], (B, L, L))
    layer_rows_mask = jnp.concatenate([attn_f, layer_mask], axis=-1)  # [B, L, 2L]

    if use_kernel:
        # additive bias (0 / -1e9), bf16 -> ~4x fewer mask bytes, no where()
        mask_bias = (jnp.float32(-1e9) * layer_rows_mask).astype(jnp.bfloat16)
        scale = jnp.float32(1.0 / math.sqrt(d_k))
        fused = []
        for lp in params["layers"]:
            wq = (lp["wq"] * scale).astype(jnp.bfloat16)                    # [D, dm]
            wkv = jnp.concatenate([lp["wk"], lp["wv"]], axis=1).astype(jnp.bfloat16)  # [D, 2dm]
            bq = (lp["bq"] * scale).astype(jnp.float32)                     # [1, dm]
            bkv = jnp.concatenate([lp["bk"], lp["bv"]], axis=1).astype(jnp.float32)   # [1, 2dm]
            fused.append((wq, wkv, bq, bkv))
    else:
        full_mask = jnp.concatenate(
            [jnp.ones_like(layer_rows_mask), layer_rows_mask], axis=1)      # [B, 2L, 2L]

    for li, lp in enumerate(params["layers"]):
        layer_cat = jnp.concatenate([layer_, tem_enc_layer], axis=-1)       # [B, L, D]
        if use_kernel:
            wq, wkv, bq, bkv = fused[li]
            out_layer = multi_head_attention_pallas(
                enc_input, layer_cat, mask_bias, wq, wkv, bq, bkv,
                n_head=n_head).astype(jnp.float32)                          # [B, L, dm]
        else:
            combined_input = jnp.concatenate([enc_input, layer_cat], axis=1)  # [B, 2L, D]
            full = multi_head_attention_ref(
                combined_input, full_mask, lp["wq"], lp["bq"], lp["wk"],
                lp["bk"], lp["wv"], lp["bv"], n_head=n_head)                # [B, 2L, dm]
            out_layer = full[:, L:, :]
        # torch: enc_output *= combined_non_pad; layer_ = tanh(enc_output[:, L:, :])
        layer_ = jnp.tanh(out_layer * npm[..., None])                       # [B, L, dm]
    # use_norm=False
    return layer_


# ----------------------------------------------------------------------------
# Deterministic parameter / input construction and test
# ----------------------------------------------------------------------------
def make_params(key, *, num_types, pad_index, d_model, d_time, n_layers):
    D = d_model + d_time
    keys = jax.random.split(key, 1 + 6 * n_layers)
    emb = 0.1 * jax.random.normal(keys[0], (num_types, d_model), jnp.float32)
    emb = emb.at[pad_index].set(0.0)                      # padding_idx row is zero
    div_term = jnp.exp(jnp.arange(0, d_time, 2, dtype=jnp.float32)
                       * (-(math.log(10000.0) / d_time))).reshape(1, 1, -1)
    layers = []
    for l in range(n_layers):
        k = keys[1 + 6 * l: 1 + 6 * (l + 1)]
        layers.append(dict(
            wq=0.1 * jax.random.normal(k[0], (D, d_model), jnp.float32),
            bq=0.1 * jax.random.normal(k[1], (1, d_model), jnp.float32),
            wk=0.1 * jax.random.normal(k[2], (D, d_model), jnp.float32),
            bk=0.1 * jax.random.normal(k[3], (1, d_model), jnp.float32),
            wv=0.1 * jax.random.normal(k[4], (D, d_model), jnp.float32),
            bv=0.1 * jax.random.normal(k[5], (1, d_model), jnp.float32),
        ))
    return dict(emb=emb, div_term=div_term, layers=layers)


if __name__ == "__main__":
    # small, module-consistent sizes; B=4 so bt=2 exercises the batched
    # projection path while keeping grid = 2 (v7x megacore sharding).
    B, L = 4, 8
    d_model, d_time, n_head, n_layers = 32, 16, 2, 2
    num_types, pad_index = 6, 0

    key = jax.random.PRNGKey(0)
    kp, ke, kt = jax.random.split(key, 3)
    params = make_params(kp, num_types=num_types, pad_index=pad_index,
                         d_model=d_model, d_time=d_time, n_layers=n_layers)

    event_seqs = jax.random.randint(ke, (B, L), 1, num_types, dtype=jnp.int32)
    time_seqs = jnp.cumsum(jax.random.uniform(kt, (B, L), jnp.float32), axis=1)

    # variable-length sequences (trailing positions are padding)
    lengths = jnp.array([L, L - 2, L - 1, L - 3], dtype=jnp.int32)
    batch_non_pad_mask = jnp.arange(L)[None, :] < lengths[:, None]
    event_seqs = jnp.where(batch_non_pad_mask, event_seqs, pad_index)
    time_seqs = time_seqs * batch_non_pad_mask.astype(jnp.float32)

    # attention_mask: 1/True == masked out; event i may only see strictly-earlier
    # non-pad events (standard attNHP subsequent+pad mask)
    idx = jnp.arange(L)
    subsequent = (idx[None, :] >= idx[:, None])[None]                 # [1, L, L]
    pad_cols = (~batch_non_pad_mask)[:, None, :]                      # [B, 1, L]
    attention_mask = jnp.broadcast_to(subsequent, (B, L, L)) | pad_cols

    fwd = functools.partial(xfmr_nhp_fast_forward, params,
                            n_head=n_head, d_time=d_time)

    out = jax.block_until_ready(
        jax.jit(functools.partial(fwd, use_kernel=True))(
            event_seqs, time_seqs, batch_non_pad_mask, attention_mask))
    ref = jax.block_until_ready(
        jax.jit(functools.partial(fwd, use_kernel=False))(
            event_seqs, time_seqs, batch_non_pad_mask, attention_mask))

    assert out.shape == (B, L, d_model)
    # bf16 MXU operands + bf16 output + approx reciprocal vs a pure-f32 reference
    max_err = float(jnp.max(jnp.abs(out - ref)))
    assert jnp.allclose(out, ref, atol=3e-2, rtol=3e-2), f"max abs err {max_err}"
    print("KERNEL_OK")
</pallas_src>

<mosaic_0001>
module attributes {stable_mosaic.version = 11 : i64} {
  func.func @_mha_layer_kernel(%arg0: i32, %arg1: memref<16x48xf32, #tpu.memory_space<vmem>>, %arg2: memref<16x48xf32, #tpu.memory_space<vmem>>, %arg3: memref<2x8x16xbf16, #tpu.memory_space<vmem>>, %arg4: memref<48x32xbf16, #tpu.memory_space<vmem>>, %arg5: memref<48x64xbf16, #tpu.memory_space<vmem>>, %arg6: memref<1x32xf32, #tpu.memory_space<vmem>>, %arg7: memref<1x64xf32, #tpu.memory_space<vmem>>, %arg8: memref<2x8x32xbf16, #tpu.memory_space<vmem>>) attributes {dimension_semantics = [#tpu.dimension_semantics<parallel>], iteration_bounds = array<i64: 2>, scalar_prefetch = 0 : i64, scratch_operands = 0 : i64, tpu.core_type = #tpu.core_type<tc>, window_params = [{transform_indices = @transform_0, window_bounds = array<i64: 16, 48>}, {transform_indices = @transform_1, window_bounds = array<i64: 16, 48>}, {transform_indices = @transform_2, window_bounds = array<i64: 2, 8, 16>}, {pipeline_mode = #tpu.pipeline_mode<synchronous>, transform_indices = @transform_3, window_bounds = array<i64: 48, 32>}, {pipeline_mode = #tpu.pipeline_mode<synchronous>, transform_indices = @transform_4, window_bounds = array<i64: 48, 64>}, {pipeline_mode = #tpu.pipeline_mode<synchronous>, transform_indices = @transform_5, window_bounds = array<i64: 1, 32>}, {pipeline_mode = #tpu.pipeline_mode<synchronous>, transform_indices = @transform_6, window_bounds = array<i64: 1, 64>}, {transform_indices = @transform_7, window_bounds = array<i64: 2, 8, 32>}]} {
    %c0 = arith.constant 0 : index
    %c0_0 = arith.constant 0 : index
    %0 = vector.load %arg1[%c0, %c0_0] : memref<16x48xf32, #tpu.memory_space<vmem>>, vector<16x48xf32>
    %1 = arith.truncf %0 : vector<16x48xf32> to vector<16x48xbf16>
    %c0_1 = arith.constant 0 : index
    %c0_2 = arith.constant 0 : index
    %2 = vector.load %arg2[%c0_1, %c0_2] : memref<16x48xf32, #tpu.memory_space<vmem>>, vector<16x48xf32>
    %3 = arith.truncf %2 : vector<16x48xf32> to vector<16x48xbf16>
    %c0_3 = arith.constant 0 : index
    %c0_4 = arith.constant 0 : index
    %4 = vector.load %arg4[%c0_3, %c0_4] : memref<48x32xbf16, #tpu.memory_space<vmem>>, vector<48x32xbf16>
    %c0_5 = arith.constant 0 : index
    %c0_6 = arith.constant 0 : index
    %5 = vector.load %arg5[%c0_5, %c0_6] : memref<48x64xbf16, #tpu.memory_space<vmem>>, vector<48x64xbf16>
    %cst = arith.constant dense<0.000000e+00> : vector<16x32xf32>
    %6 = tpu.matmul %3, %4, %cst {dimension_numbers = #tpu.dot_dimension_numbers<[1], [0], [0], [1], [0, 0, 1, 1], [], []>} : vector<16x48xbf16>, vector<48x32xbf16>, vector<16x32xf32> -> vector<16x32xf32>
    %c0_7 = arith.constant 0 : index
    %c0_8 = arith.constant 0 : index
    %7 = vector.load %arg6[%c0_7, %c0_8] : memref<1x32xf32, #tpu.memory_space<vmem>>, vector<1x32xf32>
    %8 = vector.broadcast %7 : vector<1x32xf32> to vector<16x32xf32>
    %9 = arith.addf %6, %8 : vector<16x32xf32>
    %cst_9 = arith.constant dense<0.000000e+00> : vector<16x64xf32>
    %10 = tpu.matmul %3, %5, %cst_9 {dimension_numbers = #tpu.dot_dimension_numbers<[1], [0], [0], [1], [0, 0, 1, 1], [], []>} : vector<16x48xbf16>, vector<48x64xbf16>, vector<16x64xf32> -> vector<16x64xf32>
    %c0_10 = arith.constant 0 : index
    %c0_11 = arith.constant 0 : index
    %11 = vector.load %arg7[%c0_10, %c0_11] : memref<1x64xf32, #tpu.memory_space<vmem>>, vector<1x64xf32>
    %12 = vector.broadcast %11 : vector<1x64xf32> to vector<16x64xf32>
    %13 = arith.addf %10, %12 : vector<16x64xf32>
    %cst_12 = arith.constant dense<0.000000e+00> : vector<16x64xf32>
    %14 = tpu.matmul %1, %5, %cst_12 {dimension_numbers = #tpu.dot_dimension_numbers<[1], [0], [0], [1], [0, 0, 1, 1], [], []>} : vector<16x48xbf16>, vector<48x64xbf16>, vector<16x64xf32> -> vector<16x64xf32>
    %c0_13 = arith.constant 0 : index
    %c0_14 = arith.constant 0 : index
    %15 = vector.load %arg7[%c0_13, %c0_14] : memref<1x64xf32, #tpu.memory_space<vmem>>, vector<1x64xf32>
    %16 = vector.broadcast %15 : vector<1x64xf32> to vector<16x64xf32>
    %17 = arith.addf %14, %16 : vector<16x64xf32>
    %18 = vector.extract_strided_slice %9 {offsets = [0, 0], sizes = [8, 32], strides = [1, 1]} : vector<16x32xf32> to vector<8x32xf32>
    %19 = arith.truncf %18 : vector<8x32xf32> to vector<8x32xbf16>
    %20 = vector.extract_strided_slice %17 {offsets = [0, 0], sizes = [8, 32], strides = [1, 1]} : vector<16x64xf32> to vector<8x32xf32>
    %21 = vector.extract_strided_slice %13 {offsets = [0, 0], sizes = [8, 32], strides = [1, 1]} : vector<16x64xf32> to vector<8x32xf32>
    %22 = tpu.concatenate %20, %21 in 0 : vector<8x32xf32>, vector<8x32xf32> -> vector<16x32xf32>
    %23 = arith.truncf %22 : vector<16x32xf32> to vector<16x32xbf16>
    %24 = vector.extract_strided_slice %17 {offsets = [0, 32], sizes = [8, 32], strides = [1, 1]} : vector<16x64xf32> to vector<8x32xf32>
    %25 = vector.extract_strided_slice %13 {offsets = [0, 32], sizes = [8, 32], strides = [1, 1]} : vector<16x64xf32> to vector<8x32xf32>
    %26 = tpu.concatenate %24, %25 in 0 : vector<8x32xf32>, vector<8x32xf32> -> vector<16x32xf32>
    %27 = arith.truncf %26 : vector<16x32xf32> to vector<16x32xbf16>
    %c0_15 = arith.constant 0 : index
    %c0_16 = arith.constant 0 : index
    %c0_17 = arith.constant 0 : index
    %28 = vector.load %arg3[%c0_15, %c0_16, %c0_17] : memref<2x8x16xbf16, #tpu.memory_space<vmem>>, vector<1x8x16xbf16>
    %29 = vector.shape_cast %28 : vector<1x8x16xbf16> to vector<8x16xbf16>
    %30 = arith.extf %29 : vector<8x16xbf16> to vector<8x16xf32>
    %31 = vector.extract_strided_slice %19 {offsets = [0, 0], sizes = [8, 16], strides = [1, 1]} : vector<8x32xbf16> to vector<8x16xbf16>
    %32 = vector.extract_strided_slice %23 {offsets = [0, 0], sizes = [16, 16], strides = [1, 1]} : vector<16x32xbf16> to vector<16x16xbf16>
    %cst_18 = arith.constant dense<0.000000e+00> : vector<8x16xf32>
    %33 = tpu.matmul %31, %32, %cst_18 {dimension_numbers = #tpu.dot_dimension_numbers<[1], [1], [0], [0], [0, 0, 1, 0], [], []>} : vector<8x16xbf16>, vector<16x16xbf16>, vector<8x16xf32> -> vector<8x16xf32>
    %34 = arith.addf %33, %30 : vector<8x16xf32>
    %cst_19 = arith.constant dense<0xFF800000> : vector<8xf32>
    %35 = vector.multi_reduction <maximumf>, %34, %cst_19 [1] : vector<8x16xf32> to vector<8xf32>
    %36 = vector.shape_cast %35 : vector<8xf32> to vector<8x1xf32>
    %37 = vector.broadcast %36 : vector<8x1xf32> to vector<8x16xf32>
    %38 = arith.subf %34, %37 : vector<8x16xf32>
    %39 = math.exp %38 : vector<8x16xf32>
    %cst_20 = arith.constant dense<0.000000e+00> : vector<8xf32>
    %40 = vector.multi_reduction <add>, %39, %cst_20 [1] : vector<8x16xf32> to vector<8xf32>
    %41 = vector.shape_cast %40 : vector<8xf32> to vector<8x1xf32>
    %42 = tpu.reciprocal %41 {approx = true} : vector<8x1xf32> -> vector<8x1xf32>
    %43 = vector.broadcast %42 : vector<8x1xf32> to vector<8x16xf32>
    %44 = arith.mulf %39, %43 : vector<8x16xf32>
    %45 = arith.truncf %44 : vector<8x16xf32> to vector<8x16xbf16>
    %46 = vector.extract_strided_slice %27 {offsets = [0, 0], sizes = [16, 16], strides = [1, 1]} : vector<16x32xbf16> to vector<16x16xbf16>
    %cst_21 = arith.constant dense<0.000000e+00> : vector<8x16xf32>
    %47 = tpu.matmul %45, %46, %cst_21 {dimension_numbers = #tpu.dot_dimension_numbers<[1], [0], [0], [1], [0, 0, 1, 1], [], []>} : vector<8x16xbf16>, vector<16x16xbf16>, vector<8x16xf32> -> vector<8x16xf32>
    %48 = vector.extract_strided_slice %19 {offsets = [0, 16], sizes = [8, 16], strides = [1, 1]} : vector<8x32xbf16> to vector<8x16xbf16>
    %49 = vector.extract_strided_slice %23 {offsets = [0, 16], sizes = [16, 16], strides = [1, 1]} : vector<16x32xbf16> to vector<16x16xbf16>
    %cst_22 = arith.constant dense<0.000000e+00> : vector<8x16xf32>
    %50 = tpu.matmul %48, %49, %cst_22 {dimension_numbers = #tpu.dot_dimension_numbers<[1], [1], [0], [0], [0, 0, 1, 0], [], []>} : vector<8x16xbf16>, vector<16x16xbf16>, vector<8x16xf32> -> vector<8x16xf32>
    %51 = arith.addf %50, %30 : vector<8x16xf32>
    %cst_23 = arith.constant dense<0xFF800000> : vector<8xf32>
    %52 = vector.multi_reduction <maximumf>, %51, %cst_23 [1] : vector<8x16xf32> to vector<8xf32>
    %53 = vector.shape_cast %52 : vector<8xf32> to vector<8x1xf32>
    %54 = vector.broadcast %53 : vector<8x1xf32> to vector<8x16xf32>
    %55 = arith.subf %51, %54 : vector<8x16xf32>
    %56 = math.exp %55 : vector<8x16xf32>
    %cst_24 = arith.constant dense<0.000000e+00> : vector<8xf32>
    %57 = vector.multi_reduction <add>, %56, %cst_24 [1] : vector<8x16xf32> to vector<8xf32>
    %58 = vector.shape_cast %57 : vector<8xf32> to vector<8x1xf32>
    %59 = tpu.reciprocal %58 {approx = true} : vector<8x1xf32> -> vector<8x1xf32>
    %60 = vector.broadcast %59 : vector<8x1xf32> to vector<8x16xf32>
    %61 = arith.mulf %56, %60 : vector<8x16xf32>
    %62 = arith.truncf %61 : vector<8x16xf32> to vector<8x16xbf16>
    %63 = vector.extract_strided_slice %27 {offsets = [0, 16], sizes = [16, 16], strides = [1, 1]} : vector<16x32xbf16> to vector<16x16xbf16>
    %cst_25 = arith.constant dense<0.000000e+00> : vector<8x16xf32>
    %64 = tpu.matmul %62, %63, %cst_25 {dimension_numbers = #tpu.dot_dimension_numbers<[1], [0], [0], [1], [0, 0, 1, 1], [], []>} : vector<8x16xbf16>, vector<16x16xbf16>, vector<8x16xf32> -> vector<8x16xf32>
    %65 = tpu.concatenate %47, %64 in 1 : vector<8x16xf32>, vector<8x16xf32> -> vector<8x32xf32>
    %66 = arith.truncf %65 : vector<8x32xf32> to vector<8x32xbf16>
    %c0_26 = arith.constant 0 : index
    %c0_27 = arith.constant 0 : index
    %c0_28 = arith.constant 0 : index
    %67 = vector.load %arg8[%c0_26, %c0_27, %c0_28] : memref<2x8x32xbf16, #tpu.memory_space<vmem>>, vector<1x8x32xbf16>
    %68 = vector.shape_cast %67 : vector<1x8x32xbf16> to vector<8x32xbf16>
    %69 = vector.shape_cast %66 : vector<8x32xbf16> to vector<1x8x32xbf16>
    tpu.vector_store %arg8[%c0_26, %c0_27, %c0_28], %69 {strides = array<i32>} : memref<2x8x32xbf16, #tpu.memory_space<vmem>>, vector<1x8x32xbf16>,
    %70 = vector.extract_strided_slice %9 {offsets = [8, 0], sizes = [8, 32], strides = [1, 1]} : vector<16x32xf32> to vector<8x32xf32>
    %71 = arith.truncf %70 : vector<8x32xf32> to vector<8x32xbf16>
    %72 = vector.extract_strided_slice %17 {offsets = [8, 0], sizes = [8, 32], strides = [1, 1]} : vector<16x64xf32> to vector<8x32xf32>
    %73 = vector.extract_strided_slice %13 {offsets = [8, 0], sizes = [8, 32], strides = [1, 1]} : vector<16x64xf32> to vector<8x32xf32>
    %74 = tpu.concatenate %72, %73 in 0 : vector<8x32xf32>, vector<8x32xf32> -> vector<16x32xf32>
    %75 = arith.truncf %74 : vector<16x32xf32> to vector<16x32xbf16>
    %76 = vector.extract_strided_slice %17 {offsets = [8, 32], sizes = [8, 32], strides = [1, 1]} : vector<16x64xf32> to vector<8x32xf32>
    %77 = vector.extract_strided_slice %13 {offsets = [8, 32], sizes = [8, 32], strides = [1, 1]} : vector<16x64xf32> to vector<8x32xf32>
    %78 = tpu.concatenate %76, %77 in 0 : vector<8x32xf32>, vector<8x32xf32> -> vector<16x32xf32>
    %79 = arith.truncf %78 : vector<16x32xf32> to vector<16x32xbf16>
    %c1 = arith.constant 1 : index
    %c0_29 = arith.constant 0 : index
    %c0_30 = arith.constant 0 : index
    %80 = vector.load %arg3[%c1, %c0_29, %c0_30] : memref<2x8x16xbf16, #tpu.memory_space<vmem>>, vector<1x8x16xbf16>
    %81 = vector.shape_cast %80 : vector<1x8x16xbf16> to vector<8x16xbf16>
    %82 = arith.extf %81 : vector<8x16xbf16> to vector<8x16xf32>
    %83 = vector.extract_strided_slice %71 {offsets = [0, 0], sizes = [8, 16], strides = [1, 1]} : vector<8x32xbf16> to vector<8x16xbf16>
    %84 = vector.extract_strided_slice %75 {offsets = [0, 0], sizes = [16, 16], strides = [1, 1]} : vector<16x32xbf16> to vector<16x16xbf16>
    %cst_31 = arith.constant dense<0.000000e+00> : vector<8x16xf32>
    %85 = tpu.matmul %83, %84, %cst_31 {dimension_numbers = #tpu.dot_dimension_numbers<[1], [1], [0], [0], [0, 0, 1, 0], [], []>} : vector<8x16xbf16>, vector<16x16xbf16>, vector<8x16xf32> -> vector<8x16xf32>
    %86 = arith.addf %85, %82 : vector<8x16xf32>
    %cst_32 = arith.constant dense<0xFF800000> : vector<8xf32>
    %87 = vector.multi_reduction <maximumf>, %86, %cst_32 [1] : vector<8x16xf32> to vector<8xf32>
    %88 = vector.shape_cast %87 : vector<8xf32> to vector<8x1xf32>
    %89 = vector.broadcast %88 : vector<8x1xf32> to vector<8x16xf32>
    %90 = arith.subf %86, %89 : vector<8x16xf32>
    %91 = math.exp %90 : vector<8x16xf32>
    %cst_33 = arith.constant dense<0.000000e+00> : vector<8xf32>
    %92 = vector.multi_reduction <add>, %91, %cst_33 [1] : vector<8x16xf32> to vector<8xf32>
    %93 = vector.shape_cast %92 : vector<8xf32> to vector<8x1xf32>
    %94 = tpu.reciprocal %93 {approx = true} : vector<8x1xf32> -> vector<8x1xf32>
    %95 = vector.broadcast %94 : vector<8x1xf32> to vector<8x16xf32>
    %96 = arith.mulf %91, %95 : vector<8x16xf32>
    %97 = arith.truncf %96 : vector<8x16xf32> to vector<8x16xbf16>
    %98 = vector.extract_strided_slice %79 {offsets = [0, 0], sizes = [16, 16], strides = [1, 1]} : vector<16x32xbf16> to vector<16x16xbf16>
    %cst_34 = arith.constant dense<0.000000e+00> : vector<8x16xf32>
    %99 = tpu.matmul %97, %98, %cst_34 {dimension_numbers = #tpu.dot_dimension_numbers<[1], [0], [0], [1], [0, 0, 1, 1], [], []>} : vector<8x16xbf16>, vector<16x16xbf16>, vector<8x16xf32> -> vector<8x16xf32>
    %100 = vector.extract_strided_slice %71 {offsets = [0, 16], sizes = [8, 16], strides = [1, 1]} : vector<8x32xbf16> to vector<8x16xbf16>
    %101 = vector.extract_strided_slice %75 {offsets = [0, 16], sizes = [16, 16], strides = [1, 1]} : vector<16x32xbf16> to vector<16x16xbf16>
    %cst_35 = arith.constant dense<0.000000e+00> : vector<8x16xf32>
    %102 = tpu.matmul %100, %101, %cst_35 {dimension_numbers = #tpu.dot_dimension_numbers<[1], [1], [0], [0], [0, 0, 1, 0], [], []>} : vector<8x16xbf16>, vector<16x16xbf16>, vector<8x16xf32> -> vector<8x16xf32>
    %103 = arith.addf %102, %82 : vector<8x16xf32>
    %cst_36 = arith.constant dense<0xFF800000> : vector<8xf32>
    %104 = vector.multi_reduction <maximumf>, %103, %cst_36 [1] : vector<8x16xf32> to vector<8xf32>
    %105 = vector.shape_cast %104 : vector<8xf32> to vector<8x1xf32>
    %106 = vector.broadcast %105 : vector<8x1xf32> to vector<8x16xf32>
    %107 = arith.subf %103, %106 : vector<8x16xf32>
    %108 = math.exp %107 : vector<8x16xf32>
    %cst_37 = arith.constant dense<0.000000e+00> : vector<8xf32>
    %109 = vector.multi_reduction <add>, %108, %cst_37 [1] : vector<8x16xf32> to vector<8xf32>
    %110 = vector.shape_cast %109 : vector<8xf32> to vector<8x1xf32>
    %111 = tpu.reciprocal %110 {approx = true} : vector<8x1xf32> -> vector<8x1xf32>
    %112 = vector.broadcast %111 : vector<8x1xf32> to vector<8x16xf32>
    %113 = arith.mulf %108, %112 : vector<8x16xf32>
    %114 = arith.truncf %113 : vector<8x16xf32> to vector<8x16xbf16>
    %115 = vector.extract_strided_slice %79 {offsets = [0, 16], sizes = [16, 16], strides = [1, 1]} : vector<16x32xbf16> to vector<16x16xbf16>
    %cst_38 = arith.constant dense<0.000000e+00> : vector<8x16xf32>
    %116 = tpu.matmul %114, %115, %cst_38 {dimension_numbers = #tpu.dot_dimension_numbers<[1], [0], [0], [1], [0, 0, 1, 1], [], []>} : vector<8x16xbf16>, vector<16x16xbf16>, vector<8x16xf32> -> vector<8x16xf32>
    %117 = tpu.concatenate %99, %116 in 1 : vector<8x16xf32>, vector<8x16xf32> -> vector<8x32xf32>
    %118 = arith.truncf %117 : vector<8x32xf32> to vector<8x32xbf16>
    %c1_39 = arith.constant 1 : index
    %c0_40 = arith.constant 0 : index
    %c0_41 = arith.constant 0 : index
    %119 = vector.load %arg8[%c1_39, %c0_40, %c0_41] : memref<2x8x32xbf16, #tpu.memory_space<vmem>>, vector<1x8x32xbf16>
    %120 = vector.shape_cast %119 : vector<1x8x32xbf16> to vector<8x32xbf16>
    %121 = vector.shape_cast %118 : vector<8x32xbf16> to vector<1x8x32xbf16>
    tpu.vector_store %arg8[%c1_39, %c0_40, %c0_41], %121 {strides = array<i32>} : memref<2x8x32xbf16, #tpu.memory_space<vmem>>, vector<1x8x32xbf16>,
    return
  }
  func.func @transform_0(%arg0: i32) -> (i32, i32) {
    %c0_i32 = arith.constant 0 : i32
    %c0_i32_0 = arith.constant 0 : i32
    return %arg0, %c0_i32 : i32, i32
  }
  func.func @transform_1(%arg0: i32) -> (i32, i32) {
    %c0_i32 = arith.constant 0 : i32
    %c0_i32_0 = arith.constant 0 : i32
    return %arg0, %c0_i32 : i32, i32
  }
  func.func @transform_2(%arg0: i32) -> (i32, i32, i32) {
    %c0_i32 = arith.constant 0 : i32
    %c0_i32_0 = arith.constant 0 : i32
    %c0_i32_1 = arith.constant 0 : i32
    return %arg0, %c0_i32, %c0_i32_0 : i32, i32, i32
  }
  func.func @transform_3(%arg0: i32) -> (i32, i32) {
    %c0_i32 = arith.constant 0 : i32
    %c0_i32_0 = arith.constant 0 : i32
    %c0_i32_1 = arith.constant 0 : i32
    return %c0_i32, %c0_i32_0 : i32, i32
  }
  func.func @transform_4(%arg0: i32) -> (i32, i32) {
    %c0_i32 = arith.constant 0 : i32
    %c0_i32_0 = arith.constant 0 : i32
    %c0_i32_1 = arith.constant 0 : i32
    return %c0_i32, %c0_i32_0 : i32, i32
  }
  func.func @transform_5(%arg0: i32) -> (i32, i32) {
    %c0_i32 = arith.constant 0 : i32
    %c0_i32_0 = arith.constant 0 : i32
    %c0_i32_1 = arith.constant 0 : i32
    return %c0_i32, %c0_i32_0 : i32, i32
  }
  func.func @transform_6(%arg0: i32) -> (i32, i32) {
    %c0_i32 = arith.constant 0 : i32
    %c0_i32_0 = arith.constant 0 : i32
    %c0_i32_1 = arith.constant 0 : i32
    return %c0_i32, %c0_i32_0 : i32, i32
  }
  func.func @transform_7(%arg0: i32) -> (i32, i32, i32) {
    %c0_i32 = arith.constant 0 : i32
    %c0_i32_0 = arith.constant 0 : i32
    %c0_i32_1 = arith.constant 0 : i32
    return %arg0, %c0_i32, %c0_i32_0 : i32, i32, i32
  }
}

</mosaic_0001>

<bundles_post_ra>
// kernel: xfmr_nhp_fast_forward.2
= control target key start
LH: loop header
LB: loop body
LE: loop exit
PB: predicated region body
PF: predicated region fallthrough
CT: control target
= control target key end

     0   :  { %s1296_s24 = smov 0   ;;  %s1427_s0 = inlined_call_operand.vmem [shape: f32[32,48], index: 0, kind: input, shape index: {}]   ;;  %s1428_s1 = inlined_call_operand.vmem [shape: f32[32,48], index: 1, kind: input, shape index: {}]   ;;  %s1429_s2 = inlined_call_operand.vmem [shape: bf16[4,8,16], index: 2, kind: input, shape index: {}]   ;;  %s1430_s3 = inlined_call_operand.vmem [shape: bf16[48,32], index: 3, kind: input, shape index: {}]   ;;  %s1431_s4 = inlined_call_operand.vmem [shape: bf16[48,64], index: 4, kind: input, shape index: {}]   ;;  %s1432_s5 = inlined_call_operand.vmem [shape: f32[1,32], index: 5, kind: input, shape index: {}]   ;;  %s1433_s6 = inlined_call_operand.vmem [shape: f32[1,64], index: 6, kind: input, shape index: {}]   ;;  %s1434_s7 = inlined_call_operand.vmem [shape: bf16[4,8,32], index: 7, kind: output, shape index: {}]  }
   0x1 LB: > { %s1059_s25 = sadd.s32 4294967295, %s1248_s24   ;;  %p1063_p0 = scmp.ge.s32.totalorder %s1248_s24, 1  ;;  %s1248_s24 = sphi %s1296_s24, %s17_s24  }
   0x2   : > { %p260_p1 = scmp.lt.s32.totalorder %s1248_s24, 3 }
   0x4   : > { %p261_p2 = pnand %p1063_p0, %p260_p1 }
   0x5   : > { %s1064_s9 = sshll.u32 (!%p261_p2), %s1059_s25, 1  ;;  %s1252_s28 = smov (!%p261_p2), 112  }
   0x6   : > { %264 = sbr.rel (%p261_p2) target bundleno = 1202 (0x4b2), region = 48  ;;  %p303_p3 = scmp.lt.s32.totalorder (!%p261_p2), %s1064_s9, 3 }
   0x7   : > { %s1253_s11 = smov (!%p261_p2), 96   ;;  %s1254_s12 = smov (!%p261_p2), 80  }
   0x8   : > { %s1255_s13 = smov (!%p261_p2), 16  }
   0xb   : > { %v1220_v0 = vld [vmem:[%s1430_s3 + $0x10] sm:$0xff]   ;;  %v1250_v1 = vmov 0.0   ;;  %v1221_v2 = vld [vmem:[%s1430_s3 + $0x8] sm:$0xff]   ;;  %vm1251_vm0 = vmmov 0   ;;  %s1436_s9 = smov (!%p303_p3, %s1064_s9), 3  ;;  %v1223_v5 = vld [vmem:[%s1430_s3] sm:$0xff]  }
   0xc   : > { %1123 = vmatprep.subr.bf16.mxu0 %v1250_v1  ;;  %1133 = vmatprep.subr.bf16.mxu1 %v1250_v1  ;;  %v1222_v3 = vld [vmem:[%s1431_s4 + $0x10] sm:$0xff]   ;;  %v1224_v4 = vld [vmem:[%s1431_s4 + $0x8] sm:$0xff]   ;;  %s1065_s14 = sshll.u32 %s1436_s9, 3  ;;  %v1225_v6 = vld [vmem:[%s1431_s4] sm:$0xff]   ;;  %vm370_vm1 = vcmask 392192   ;;  %vm529_vm2 = vcmask 130048  }
   0xd   : > { %1124 = vmatpush3.bf16.msra.mxu0 %v1220_v0  ;;  %1129 = vmatprep.mubr.msk.bf16.mxu0 %vm1251_vm0, %v1250_v1  ;;  %s312_s17 = scalar_lea.vmem %s1428_s1, %s1065_s14  ;;  %s306_s22 = scalar_lea.vmem %s1427_s0, %s1065_s14  ;;  %v1077_v20 = vld [vmem:[%s1433_s6] ss:$0 sm:$0xff]  ;;  %vm750_vm3 = vcmask 257024  }
   0xe   : > { %1125 = vmatprep.subr.bf16.mxu0 %v1250_v1  ;;  %1139 = vmatprep.mubr.msk.bf16.mxu1 %vm1251_vm0, %v1250_v1  ;;  %v330_v7 = vld [vmem:[%s312_s17] sm:$0xff]  ;;  %v331_v8 = vld [vmem:[%s312_s17 + $0x8] sm:$0xff]  ;;  %s1069_s29 = sshll.u32 %s1436_s9, 2 }
   0xf   : > { %1134 = vmatpush3.bf16.msra.mxu1 %v1222_v3  ;;  %v332_v9 = vpack.c.bf16 %v331_v8, %v330_v7  ;;  %v327_v10 = vld [vmem:[%s306_s22] sm:$0xff]  ;;  %v328_v11 = vld [vmem:[%s306_s22 + $0x8] sm:$0xff]  ;;  %s318_s10 = scalar_lea.vmem %s1429_s2, %s1069_s29  ;;  %s324_s16 = scalar_lea.vmem %s1434_s7, %s1069_s29 }
  0x10   : > { %1135 = vmatprep.subr.bf16.mxu1 %v1250_v1  ;;  %v329_v12 = vpack.c.bf16 %v328_v11, %v327_v10  ;;  %v1072_v23 = vld [vmem:[%s1432_s5] ss:$0 sm:$0xff] }
  0x11   : > { %1126 = vmatpush3.bf16.msra.mxu0 %v1221_v2  ;;  %v527_v45 = vld [vmem:[%s318_s10] sm:$0xff]  }
  0x12   : > { %1127 = vmatprep.subr.bf16.mxu0 %v1250_v1  ;;  %v528_v46 = vunpack.c.l.bf16 %v527_v45  ;;  %v756_v58 = vunpack.c.h.bf16 %v527_v45 }
  0x13   : > { %1136 = vmatpush3.bf16.msra.mxu1 %v1224_v4 }
  0x14   : > { %1137 = vmatprep.subr.bf16.mxu1 %v1250_v1 }
  0x15   : > { %1128 = vmatpush3.bf16.msra.mxu0 %v1223_v5 }
  0x16   : > { %1143 = vmatprep.subr.bf16.mxu0 %v1250_v1 }
  0x17   : > { %1138 = vmatpush3.bf16.msra.mxu1 %v1225_v6 }
  0x18   : > { %1130 = vmatmul.mubr.msk.bf16.vlgmr.msra.gmra.mxu0 %vm370_vm1, %v332_v9  ;;  %1153 = vmatprep.subr.bf16.mxu1 %v1250_v1 }
  0x19   : > { %1144 = vmatpush3.bf16.msra.mxu0 %v1222_v3  ;;  %1149 = vmatprep.mubr.msk.bf16.mxu0 %vm1251_vm0, %v1250_v1 }
  0x1a   : > { %1145 = vmatprep.subr.bf16.mxu0 %v1250_v1  ;;  %1140 = vmatmul.mubr.msk.bf16.vlgmr.msra.gmra.mxu1 %vm370_vm1, %v332_v9 }
  0x1b   : > { %1155 = vmatprep.mubr.msk.bf16.mxu1 %vm1251_vm0, %v1250_v1 }
  0x1d   : > { %1146 = vmatpush3.bf16.msra.mxu0 %v1224_v4 }
  0x1e   : > { %1147 = vmatprep.subr.bf16.mxu0 %v1250_v1 }
  0x21   : > { %1148 = vmatpush3.bf16.msra.mxu0 %v1225_v6 }
  0x22   : > { %1165 = vmatprep.subr.bf16.mxu0 %v1250_v1 }
  0x24   : > { %1150 = vmatmul.mubr.msk.bf16.vlgmr.msra.gmra.mxu0 %vm370_vm1, %v329_v12 }
  0x25   : > { %1167 = vmatprep.mubr.msk.bf16.mxu0 %vm1251_vm0, %v1250_v1 }
  0xd8   : > { %v408_v13 = vpop.f32.mrf.mxu0 }
  0xd9   : > { %v409_v27 = vadd.f32 %v1072_v23, %v408_v13 }
  0xda   : > { %v1131_v14 = vpop.f32.mrf.mxu0  ;;  %v474_v15 = vpop.f32.mrf.mxu1 }
  0xdb   : > { %v475_v22 = vadd.f32 %v1077_v20, %v474_v15  ;;  %v525_v34 = vpack.c.bf16 %v409_v27, %v409_v27 }
  0xdc   : > { %v411_v16 = vpop.f32.mrf.mxu0  ;;  %v1141_v17 = vpop.f32.mrf.mxu1 }
  0xdd   : > { %v412_v35 = vadd.f32 %v1072_v23, %v411_v16 }
  0xde   : > { %v1132_v18 = vpop.f32.mrf.mxu0  ;;  %v477_v19 = vpop.f32.mrf.mxu1 }
  0xdf   : > { %v478_v30 = vadd.f32 %v1077_v20, %v477_v19  ;;  %v752_v37 = vpack.c.bf16 %v412_v35, %v412_v35 }
  0xe0   : > { %v1142_v21 = vpop.f32.mrf.mxu1 }
  0xe4   : > { %v518_v24 = vpop.f32.mrf.mxu0 }
  0xe5   : > { %v519_v25 = vadd.f32 %v1077_v20, %v518_v24 }
  0xe6   : > { %v1151_v26 = vpop.f32.mrf.mxu0 }
  0xe7   : > { %v1361_v28 = vpack.c.bf16 %v475_v22, %v519_v25 }
  0xe8   : > { %v521_v29 = vpop.f32.mrf.mxu0 }
  0xe9   : > { %v522_v31 = vadd.f32 %v1077_v20, %v521_v29  ;;  %638 = vrot.lane.b32.xlu0 %v1361_v28, %s1252_s28  ;;  %v534_v32 = vsel %vm529_vm2, %v1361_v28, 0 }
  0xea   : > { %v1152_v33 = vpop.f32.mrf.mxu0  ;;  %1154 = vmatpush3.bf16.xpose.msra.mxu1 %v534_v32 }
  0xeb   : > { %v1366_v36 = vpack.c.bf16 %v478_v30, %v522_v31  ;;  %1159 = vmatprep.subr.bf16.mxu1 %v1250_v1 }
  0xed   : > { %636 = vrot.lane.b32.xlu0 %v525_v34, %s1252_s28  ;;  %865 = vrot.lane.b32.xlu1 %v1366_v36, %s1252_s28  ;;  %v761_v41 = vsel %vm529_vm2, %v1366_v36, 0 }
  0xf1   : > { %1156 = vmatmul.mubr.msk.bf16.vlgmr.msra.gmra.mxu1 %vm529_vm2, %v525_v34  ;;  %863 = vrot.lane.b32.xlu1 %v752_v37, %s1252_s28 }
  0xf2   : > { %1161 = vmatprep.mubr.msk.bf16.mxu1 %vm1251_vm0, %v1250_v1 }
 0x15b   : > { %v639_v38 = vpop.permute.xlu0 %638 }
 0x15c   : > { %v644_v39 = vsel %vm529_vm2, %v639_v38, 0 }
 0x15d   : > { %1166 = vmatpush3.bf16.xpose.msra.mxu0 %v644_v39 }
 0x15e   : > { %1177 = vmatprep.subr.bf16.mxu0 %v1250_v1 }
 0x15f   : > { %v637_v40 = vpop.permute.xlu0 %636  ;;  %v866_v42 = vpop.permute.xlu1 %865 }
 0x160   : > { %v871_v43 = vsel %vm529_vm2, %v866_v42, 0 }
 0x163   : > { %v864_v44 = vpop.permute.xlu1 %863 }
 0x164   : > { %1168 = vmatmul.mubr.msk.bf16.vlgmr.msra.gmra.mxu0 %vm529_vm2, %v637_v40 }
 0x165   : > { %1178 = vmatpush3.bf16.xpose.msra.mxu0 %v761_v41  ;;  %1179 = vmatprep.mubr.msk.bf16.mxu0 %vm1251_vm0, %v1250_v1 }
 0x166   : > { %1189 = vmatprep.subr.bf16.mxu0 %v1250_v1 }
 0x16c   : > { %1180 = vmatmul.mubr.msk.bf16.vlgmr.msra.gmra.mxu0 %vm529_vm2, %v752_v37 }
 0x16d   : > { %1190 = vmatpush3.bf16.xpose.msra.mxu0 %v871_v43  ;;  %1191 = vmatprep.mubr.msk.bf16.mxu0 %vm1251_vm0, %v1250_v1 }
 0x174   : > { %1192 = vmatmul.mubr.msk.bf16.vlgmr.msra.gmra.mxu0 %vm529_vm2, %v864_v44 }
 0x1b1   : > { %v570_v47 = vpop.f32.mrf.mxu1 }
 0x1b2   : > { %v571_v48 = vadd.f32 %v570_v47, %v528_v46 }
 0x1b3   : > { %v1157_v49 = vpop.f32.mrf.mxu1 }
 0x1b4   : > { %v576_v50 = vsel %vm529_vm2, %v571_v48, -inf }
 0x1b5   : > { %577 = vmax.xlane.f32.xlu0 %v576_v50  ;;  %v573_v51 = vpop.f32.mrf.mxu1 }
 0x1b7   : > { %v1158_v52 = vpop.f32.mrf.mxu1 }
 0x224   : > { %v680_v53 = vpop.f32.mrf.mxu0 }
 0x225   : > { %v681_v54 = vadd.f32 %v680_v53, %v528_v46 }
 0x226   : > { %v1169_v55 = vpop.f32.mrf.mxu0 }
 0x227   : > { %v686_v56 = vsel %vm529_vm2, %v681_v54, -inf }
 0x228   : > { %687 = vmax.xlane.f32.xlu1 %v686_v56  ;;  %v683_v57 = vpop.f32.mrf.mxu0 }
 0x22a   : > { %v1170_v59 = vpop.f32.mrf.mxu0 }
 0x22c   : > { %v797_v60 = vpop.f32.mrf.mxu0 }
 0x22d   : > { %v798_v61 = vadd.f32 %v797_v60, %v756_v58 }
 0x22e   : > { %v1181_v62 = vpop.f32.mrf.mxu0 }
 0x22f   : > { %v803_v63 = vsel %vm529_vm2, %v798_v61, -inf }
 0x230   : > { %804 = vmax.xlane.f32.xlu0 %v803_v63  ;;  %v800_v0 = vpop.f32.mrf.mxu0 }
 0x232   : > { %v1182_v2 = vpop.f32.mrf.mxu0 }
 0x234   : > { %v907_v3 = vpop.f32.mrf.mxu0 }
 0x235   : > { %v908_v4 = vadd.f32 %v907_v3, %v756_v58 }
 0x236   : > { %v1193_v5 = vpop.f32.mrf.mxu0 }
 0x237   : > { %v913_v6 = vsel %vm529_vm2, %v908_v4, -inf }
 0x238   : > { %914 = vmax.xlane.f32.xlu0 %v913_v6  ;;  %v910_v7 = vpop.f32.mrf.mxu0 }
 0x23a   : > { %v1194_v8 = vpop.f32.mrf.mxu0 }
 0x23e   : > { %v578_v9 = vpop.xlane.xlu0 %577 }
 0x23f   : > { %v579_v10 = vsub.f32 %v571_v48, %v578_v9 }
 0x241   : > { %v580_v11 = vmul.f32 1.442695, %v579_v10 }
 0x243   : > { %1226 = vpow2.f32 %v580_v11 }
 0x250   : > { %v1227_v12 = vpop.eup %1226 }
 0x251   : > { %v582_v13 = vsel %vm529_vm2, %v1227_v12, 0.0 }
 0x252   : > { %583 = vadd.xlane.f32.xlu1 %v582_v13 }
 0x263   : > { %589 = vrot.lane.b32.xlu1 %v1361_v28, %s1253_s11 }
 0x2b1   : > { %v688_v14 = vpop.xlane.xlu1 %687 }
 0x2b2   : > { %v689_v15 = vsub.f32 %v681_v54, %v688_v14 }
 0x2b4   : > { %v690_v16 = vmul.f32 1.442695, %v689_v15 }
 0x2b6   : > { %1228 = vpow2.f32 %v690_v16 }
 0x2b9   : > { %v805_v17 = vpop.xlane.xlu0 %804 }
 0x2ba   : > { %v806_v18 = vsub.f32 %v798_v61, %v805_v17 }
 0x2bc   : > { %v807_v19 = vmul.f32 1.442695, %v806_v18 }
 0x2be   : > { %1230 = vpow2.f32 %v807_v19 }
 0x2c1   : > { %v915_v20 = vpop.xlane.xlu0 %914 }
 0x2c2   : > { %v916_v21 = vsub.f32 %v908_v4, %v915_v20 }
 0x2c3   : > { %v1229_v22 = vpop.eup %1228 }
 0x2c4   : > { %v917_v23 = vmul.f32 1.442695, %v916_v21  ;;  %v692_v24 = vsel %vm529_vm2, %v1229_v22, 0.0 }
 0x2c5   : > { %693 = vadd.xlane.f32.xlu0 %v692_v24 }
 0x2c6   : > { %1232 = vpow2.f32 %v917_v23 }
 0x2cb   : > { %v1231_v25 = vpop.eup %1230 }
 0x2cc   : > { %v809_v26 = vsel %vm529_vm2, %v1231_v25, 0.0 }
 0x2cd   : > { %810 = vadd.xlane.f32.xlu1 %v809_v26 }
 0x2d3   : > { %v1233_v27 = vpop.eup %1232 }
 0x2d4   : > { %v919_v29 = vsel %vm529_vm2, %v1233_v27, 0.0 }
 0x2d5   : > { %920 = vadd.xlane.f32.xlu0 %v919_v29 }
 0x2db   : > { %v584_v30 = vpop.xlane.xlu1 %583 }
 0x2dc   : > { %1234 = vrcp.f32 %v584_v30 }
 0x2de   : > { %816 = vrot.lane.b32.xlu1 %v1366_v36, %s1253_s11 }
 0x2df   : > { %v590_v31 = vpop.permute.xlu1 %589 }
 0x2e0   : > { %1160 = vmatpush3.bf16.msra.mxu1 %v590_v31 }
 0x2e1   : > { %1171 = vmatprep.subr.bf16.mxu1 %v1250_v1 }
 0x2e2   : > { %925 = vrot.lane.b32.xlu1 %v1366_v36, %s1254_s12 }
 0x2e9   : > { %v1235_v32 = vpop.eup %1234 }
 0x2ea   : > { %v586_v33 = vmul.f32 %v1235_v32, %v1227_v12 }
 0x2eb   : > { %698 = vrot.lane.b32.xlu0 %v1361_v28, %s1254_s12 }
 0x2ec   : > { %v587_v34 = vpack.c.bf16 %v586_v33, %v586_v33 }
 0x2ee   : > { %1162 = vmatmul.mubr.msk.bf16.vlgmr.msra.gmra.mxu1 %vm529_vm2, %v587_v34 }
 0x2ef   : > { %1173 = vmatprep.mubr.msk.bf16.mxu1 %vm1251_vm0, %v1250_v1 }
 0x34e   : > { %v694_v35 = vpop.xlane.xlu0 %693 }
 0x34f   : > { %1236 = vrcp.f32 %v694_v35 }
 0x356   : > { %v811_v37 = vpop.xlane.xlu1 %810 }
 0x357   : > { %1238 = vrcp.f32 %v811_v37 }
 0x35a   : > { %v817_v42 = vpop.permute.xlu1 %816 }
 0x35c   : > { %v1237_v38 = vpop.eup %1236 }
 0x35d   : > { %v696_v40 = vmul.f32 %v1237_v38, %v1229_v22 }
 0x35e   : > { %v921_v39 = vpop.xlane.xlu0 %920  ;;  %v926_v46 = vpop.permute.xlu1 %925 }
 0x35f   : > { %1240 = vrcp.f32 %v921_v39  ;;  %v697_v36 = vpack.c.bf16 %v696_v40, %v696_v40 }
 0x362   : > { %v699_v41 = vpop.permute.xlu0 %698 }
 0x363   : > { %1172 = vmatpush3.bf16.msra.mxu1 %v699_v41 }
 0x364   : > { %1183 = vmatprep.subr.bf16.mxu1 %v1250_v1  ;;  %v1239_v28 = vpop.eup %1238 }
 0x365   : > { %v813_v43 = vmul.f32 %v1239_v28, %v1231_v25 }
 0x366   : > { %1174 = vmatmul.mubr.msk.bf16.vlgmr.msra.gmra.mxu1 %vm529_vm2, %v697_v36 }
 0x367   : > { %1184 = vmatpush3.bf16.msra.mxu1 %v817_v42  ;;  %1185 = vmatprep.mubr.msk.bf16.mxu1 %vm1251_vm0, %v1250_v1  ;;  %v814_v44 = vpack.c.bf16 %v813_v43, %v813_v43 }
 0x368   : > { %1195 = vmatprep.subr.bf16.mxu1 %v1250_v1 }
 0x36c   : > { %v1241_v45 = vpop.eup %1240 }
 0x36d   : > { %v923_v47 = vmul.f32 %v1241_v45, %v1233_v27 }
 0x36e   : > { %1186 = vmatmul.mubr.msk.bf16.vlgmr.msra.gmra.mxu1 %vm529_vm2, %v814_v44 }
 0x36f   : > { %1196 = vmatpush3.bf16.msra.mxu1 %v926_v46  ;;  %1197 = vmatprep.mubr.msk.bf16.mxu1 %vm1251_vm0, %v1250_v1  ;;  %v924_v48 = vpack.c.bf16 %v923_v47, %v923_v47 }
 0x376   : > { %1198 = vmatmul.mubr.msk.bf16.vlgmr.msra.gmra.mxu1 %vm529_vm2, %v924_v48 }
 0x3ae   : > { %v629_v49 = vpop.f32.mrf.mxu1 }
 0x3b0   : > { %v1163_v50 = vpop.f32.mrf.mxu1 }
 0x3b2   : > { %v632_v51 = vpop.f32.mrf.mxu1 }
 0x3b4   : > { %v1164_v52 = vpop.f32.mrf.mxu1 }
 0x426   : > { %v738_v53 = vpop.f32.mrf.mxu1 }
 0x428   : > { %v1175_v54 = vpop.f32.mrf.mxu1 }
 0x42a   : > { %v741_v55 = vpop.f32.mrf.mxu1 }
 0x42c   : > { %v1176_v56 = vpop.f32.mrf.mxu1 }
 0x42e   : > { %v856_v57 = vpop.f32.mrf.mxu1 }
 0x430   : > { %v1187_v58 = vpop.f32.mrf.mxu1 }
 0x432   : > { %v859_v59 = vpop.f32.mrf.mxu1 }
 0x434   : > { %v1188_v60 = vpop.f32.mrf.mxu1 }
 0x436   : > { %v965_v61 = vpop.f32.mrf.mxu1 }
 0x437   : > { %v1215_v62 = vpack.i.bf16 %v965_v61, %v738_v53 }
 0x438   : > { %v1199_v1 = vpop.f32.mrf.mxu1 }
 0x439   : > { %1216 = vrot.lane.b32.xlu0 %v1215_v62, %s1255_s13 }
 0x43a   : > { %v968_v63 = vpop.f32.mrf.mxu1 }
 0x43c   : > { %v1200_v0 = vpop.f32.mrf.mxu1 }
 0x4ab   : > { %v1217_v2 = vpop.permute.xlu0 %1216 }
 0x4ac   : > { %v1219_v3 = vunpack.i.h.bf16 %v1217_v2  ;;  %v1218_v4 = vunpack.i.l.bf16 %v1217_v2 }
 0x4ae   : > { %v975_v5 = vsel %vm529_vm2, %v856_v57, %v1219_v3  ;;  %v748_v6 = vsel %vm529_vm2, %v629_v49, %v1218_v4 }
 0x4af   : > { %v976_v7 = vpack.c.bf16 %v975_v5, %v975_v5  ;;  %v749_v8 = vpack.c.bf16 %v748_v6, %v748_v6 }
 0x4b1   : > { %751 = vst.msk [vmem:[%s324_s16] sm:$0xf] %vm750_vm3, %v749_v8  ;;  %1092 = vst.msk [vmem:[%s324_s16 + $0x4] sm:$0xf] %vm750_vm3, %v976_v7 }
 0x4b2 PF: > { %s17_s24 = sadd.s32 1, %s1248_s24  }
 0x4b3   : > { %p14_p4 = scmp.ge.s32.totalorder %s17_s24, 4  }
 0x4b5   :  { %16 = sbr.rel (!%p14_p4) target bundleno = 1 (0x1), region = 86 }

</bundles_post_ra>
